<compile_context>
chip_gen: v7x
topology: tpu7x:2x2x1
jax: 0.10.0
libtpu: 0.0.40
codegen_flags: <defaults>
</compile_context>

<pallas_src>
import jax
import jax.numpy as jnp
from jax.experimental import pallas as pl
from jax.experimental.pallas import tpu as pltpu


# ---------------- VMEM / tile policy ----------------

def _vmem_policy():
    """(block_budget_bytes, vmem_limit_bytes), generation-aware."""
    cap = None
    try:
        info = pltpu.get_tpu_info()
        cap = getattr(info, "vmem_capacity_bytes", None)
    except Exception:
        cap = None
    if cap is not None and cap <= (64 << 20):
        # v7x-class: 64 MiB physical VMEM per TensorCore -> leave headroom.
        return 6 << 20, 48 << 20
    if cap is None:
        # Unknown generation: conservative but still large blocks.
        return 8 << 20, 48 << 20
    # v5e / v6e: 128 MiB VMEM.
    return 12 << 20, 80 << 20


def _pick_tile_hw(C, HW, itemsize, block_budget_bytes, max_lanes):
    """Largest lane-dense (multiple-of-128) spatial tile whose (C, tile) block
    fits the per-block VMEM budget."""
    by_vmem = max(128, (block_budget_bytes // max(1, C * itemsize)) // 128 * 128)
    hw_rounded = int(pl.cdiv(HW, 128)) * 128
    return int(min(max_lanes, by_vmem, hw_rounded))


# ---------------- Phase 1: tiled global average pool (partial sums) ----------------

def _make_pool_kernel(C, tile_hw, HW, n_hw, n_half, ragged):
    n_chunks = tile_hw // 128

    def kernel(x_ref, sum_ref, acc_ref):
        # x_ref:   (C, tile_hw) spatial tile of one batch element (input dtype).
        # sum_ref: (C, 1) f32 partial sum for this (batch, half).
        # acc_ref: (C, 128) f32 lane-wide accumulator scratch.
        h = pl.program_id(1)
        t = pl.program_id(2)
        g = h * n_half + t          # intended global spatial-tile index

        @pl.when(t == 0)
        def _():
            acc_ref[...] = jnp.zeros_like(acc_ref)

        @pl.when(g < n_hw)          # skip gated-off tail iterations of a half
        def _():
            def load_chunk(j):
                v = x_ref[:, j * 128:(j + 1) * 128].astype(jnp.float32)
                if ragged:
                    # Mask columns past the true H*W (last block's OOB lanes
                    # hold unspecified data, not zeros).
                    col = jax.lax.broadcasted_iota(jnp.int32, (C, 128), 1)
                    col = col + (g * tile_hw + j * 128)
                    v = jnp.where(col < HW, v, 0.0)
                return v

            part = load_chunk(0)
            for j in range(1, n_chunks):            # lane-aligned VALU adds only
                part = part + load_chunk(j)
            acc_ref[...] += part

        @pl.when(t == n_half - 1)
        def _():
            # Single cross-lane reduce per (batch, half).
            sum_ref[...] = jnp.sum(acc_ref[...], axis=-1, keepdims=True)

    return kernel


# ---------------- Phase 2: per-channel rescale ----------------

def _rescale_kernel(x_ref, s_ref, o_ref):
    # x_ref: (C, tile_hw) input tile, s_ref: (C, 1) f32 sigmoid scale.
    # Multiply in f32 (matches the PyTorch reference); cast at the store.
    o_ref[...] = (x_ref[...].astype(jnp.float32) * s_ref[...]).astype(o_ref.dtype)


# ---------------- Wrapper ----------------

def eca_forward(x_nchw, conv_weight, *, _max_tile_lanes=32768):
    """x_nchw: [B, C, H, W]; conv_weight: [k] taps of Conv1d(1, 1, k, bias=False)."""
    B, C, H, W = x_nchw.shape
    HW = H * W
    k = int(conv_weight.shape[0])
    pad = (k - 1) // 2
    dtype = x_nchw.dtype
    itemsize = jnp.dtype(dtype).itemsize

    block_budget, vmem_limit = _vmem_policy()
    tile_hw = _pick_tile_hw(C, HW, itemsize, block_budget, _max_tile_lanes)
    n_hw = int(pl.cdiv(HW, tile_hw))
    ragged = (HW % tile_hw) != 0

    # Split spatial tiles into two halves (second "parallel" axis) so both v7x
    # TensorCores have work even at B == 1.
    n_halves = 2 if n_hw >= 2 else 1
    n_half = int(pl.cdiv(n_hw, n_halves))

    x_flat = x_nchw.reshape(B, C, HW)   # metadata-only reshape, no copy

    # -------- Phase 1: f32 partial sums over spatial tiles --------
    def x_pool_index_map(b, h, t):
        g = h * n_half + t
        return (b, 0, jnp.minimum(g, n_hw - 1))   # clamp: never index past array

    sums = pl.pallas_call(
        _make_pool_kernel(C, tile_hw, HW, n_hw, n_half, ragged),
        out_shape=jax.ShapeDtypeStruct((B, n_halves, C, 1), jnp.float32),
        grid_spec=pltpu.PrefetchScalarGridSpec(
            num_scalar_prefetch=0,
            grid=(B, n_halves, n_half),
            in_specs=[pl.BlockSpec((None, C, tile_hw), x_pool_index_map)],
            out_specs=pl.BlockSpec((None, None, C, 1), lambda b, h, t: (b, h, 0, 0)),
            scratch_shapes=[pltpu.VMEM((C, 128), jnp.float32)]),
        compiler_params=pltpu.CompilerParams(
            dimension_semantics=("parallel", "parallel", "arbitrary"),
            vmem_limit_bytes=vmem_limit),
        cost_estimate=pl.CostEstimate(
            flops=B * C * HW,
            transcendentals=0,
            bytes_accessed=B * C * HW * itemsize + B * n_halves * C * 4),
    )(x_flat)

    # -------- Tiny (B, C) work in the wrapper: mean -> k-tap conv -> sigmoid --------
    mean = jnp.sum(sums, axis=1)[:, :, 0] / jnp.float32(HW)     # divide by TRUE H*W
    w = conv_weight.astype(jnp.float32).reshape(-1)
    y_pad = jnp.pad(mean, ((0, 0), (pad, pad)))
    conv = jnp.zeros_like(mean)
    for t in range(k):                                          # k shifted adds
        conv = conv + w[t] * y_pad[:, t:t + C]
    scale = jax.nn.sigmoid(conv)[:, :, None]                    # (B, C, 1) in f32

    # -------- Phase 2: rescale x tiles (output emitted directly at (B, C, HW)) --------
    out_flat = pl.pallas_call(
        _rescale_kernel,
        out_shape=jax.ShapeDtypeStruct((B, C, HW), dtype),
        grid_spec=pltpu.PrefetchScalarGridSpec(
            num_scalar_prefetch=0,
            grid=(B, n_hw),
            in_specs=[
                pl.BlockSpec((None, C, tile_hw), lambda b, t: (b, 0, t)),
                pl.BlockSpec((None, C, 1), lambda b, t: (b, 0, 0)),
            ],
            out_specs=pl.BlockSpec((None, C, tile_hw), lambda b, t: (b, 0, t)),
        ),
        compiler_params=pltpu.CompilerParams(
            dimension_semantics=("parallel", "parallel"),
            vmem_limit_bytes=vmem_limit),
        cost_estimate=pl.CostEstimate(
            flops=B * C * HW,
            transcendentals=0,
            bytes_accessed=2 * B * C * HW * itemsize + B * C * 4),
    )(x_flat, scale)

    return out_flat.reshape(B, C, H, W)


# ---------------- Pure-JAX reference (mirrors the PyTorch forward) ----------------

def _reference_eca(x_nchw, conv_weight):
    B, C, H, W = x_nchw.shape
    k = conv_weight.shape[0]
    pad = (k - 1) // 2
    y = jnp.mean(x_nchw.astype(jnp.float32), axis=(2, 3))       # (B, C)
    y_pad = jnp.pad(y, ((0, 0), (pad, pad)))
    conv = jnp.zeros_like(y)
    for t in range(k):
        conv = conv + conv_weight[t] * y_pad[:, t:t + C]
    scale = jax.nn.sigmoid(conv)[:, :, None, None]
    return (x_nchw.astype(jnp.float32) * scale).astype(x_nchw.dtype)


if __name__ == "__main__":
    key = jax.random.PRNGKey(0)
    kx, kw = jax.random.split(key)

    B, C, H, W = 2, 4, 16, 16
    k_size = 3

    x = jax.random.normal(kx, (B, C, H, W), dtype=jnp.float32)
    # Conv1d(1, 1, k_size, bias=False) weight has shape (1, 1, k_size); keep the taps.
    conv_weight = (0.1 * jax.random.normal(kw, (k_size,), dtype=jnp.float32)
                   + jnp.asarray([0.2, 0.5, 0.3], dtype=jnp.float32))

    # Main check (single full-width tile path).
    out = jax.block_until_ready(eca_forward(x, conv_weight))
    ref = _reference_eca(x, conv_weight)
    assert out.shape == x.shape
    assert jnp.allclose(out, ref, atol=1e-5, rtol=1e-5), "mismatch vs reference (main)"

    # Ragged last tile + two-half split, multi-tile path (forced small tiles).
    x2 = jax.random.normal(jax.random.PRNGKey(1), (1, 4, 20, 20), dtype=jnp.float32)
    out2 = jax.block_until_ready(eca_forward(x2, conv_weight, _max_tile_lanes=128))
    ref2 = _reference_eca(x2, conv_weight)
    assert jnp.allclose(out2, ref2, atol=1e-5, rtol=1e-5), "mismatch vs reference (ragged)"

    # Gated tail iteration (odd tile count split across two halves) + ragged.
    x3 = jax.random.normal(jax.random.PRNGKey(2), (2, 8, 16, 17), dtype=jnp.float32)
    out3 = jax.block_until_ready(eca_forward(x3, conv_weight, _max_tile_lanes=128))
    ref3 = _reference_eca(x3, conv_weight)
    assert jnp.allclose(out3, ref3, atol=1e-5, rtol=1e-5), "mismatch vs reference (gated)"

    print("KERNEL_OK")
</pallas_src>

<mosaic_0001>
module attributes {stable_mosaic.version = 11 : i64} {
  func.func @kernel(%arg0: i32, %arg1: i32, %arg2: i32, %arg3: memref<1x4x256xf32, #tpu.memory_space<vmem>>, %arg4: memref<1x1x4x1xf32, #tpu.memory_space<vmem>>, %arg5: memref<4x128xf32, #tpu.memory_space<vmem>>) attributes {dimension_semantics = [#tpu.dimension_semantics<parallel>, #tpu.dimension_semantics<parallel>, #tpu.dimension_semantics<arbitrary>], iteration_bounds = array<i64: 2, 1, 1>, scalar_prefetch = 0 : i64, scratch_operands = 1 : i64, tpu.core_type = #tpu.core_type<tc>, window_params = [{transform_indices = @transform_0, window_bounds = array<i64: 1, 4, 256>}, {transform_indices = @transform_1, window_bounds = array<i64: 1, 1, 4, 1>}]} {
    %c1_i32 = arith.constant 1 : i32
    %0 = arith.muli %arg1, %c1_i32 : i32
    %1 = arith.addi %0, %arg2 : i32
    %c0_i32 = arith.constant 0 : i32
    %2 = arith.cmpi eq, %arg2, %c0_i32 : i32
    %3 = arith.extui %2 : i1 to i32
    %c0_i32_0 = arith.constant 0 : i32
    %4 = arith.cmpi ne, %3, %c0_i32_0 : i32
    scf.if %4 {
      %cst = arith.constant 0.000000e+00 : f32
      %11 = vector.broadcast %cst : f32 to vector<4x128xf32>
      %c0 = arith.constant 0 : index
      %c0_5 = arith.constant 0 : index
      %12 = vector.load %arg5[%c0, %c0_5] : memref<4x128xf32, #tpu.memory_space<vmem>>, vector<4x128xf32>
      tpu.vector_store %arg5[%c0, %c0_5], %11 {strides = array<i32>} : memref<4x128xf32, #tpu.memory_space<vmem>>, vector<4x128xf32>,
    } else {
    }
    %c1_i32_1 = arith.constant 1 : i32
    %5 = arith.cmpi slt, %1, %c1_i32_1 : i32
    %6 = arith.extui %5 : i1 to i32
    %c0_i32_2 = arith.constant 0 : i32
    %7 = arith.cmpi ne, %6, %c0_i32_2 : i32
    scf.if %7 {
      %c0 = arith.constant 0 : index
      %c0_5 = arith.constant 0 : index
      %c0_6 = arith.constant 0 : index
      %11 = vector.load %arg3[%c0, %c0_5, %c0_6] : memref<1x4x256xf32, #tpu.memory_space<vmem>>, vector<1x4x128xf32>
      %12 = vector.shape_cast %11 : vector<1x4x128xf32> to vector<4x128xf32>
      %c0_7 = arith.constant 0 : index
      %c0_8 = arith.constant 0 : index
      %c128 = arith.constant 128 : index
      %13 = vector.load %arg3[%c0_7, %c0_8, %c128] : memref<1x4x256xf32, #tpu.memory_space<vmem>>, vector<1x4x128xf32>
      %14 = vector.shape_cast %13 : vector<1x4x128xf32> to vector<4x128xf32>
      %15 = arith.addf %12, %14 : vector<4x128xf32>
      %c0_9 = arith.constant 0 : index
      %c0_10 = arith.constant 0 : index
      %16 = vector.load %arg5[%c0_9, %c0_10] : memref<4x128xf32, #tpu.memory_space<vmem>>, vector<4x128xf32>
      %17 = arith.addf %16, %15 : vector<4x128xf32>
      %c0_11 = arith.constant 0 : index
      %c0_12 = arith.constant 0 : index
      %18 = vector.load %arg5[%c0_11, %c0_12] : memref<4x128xf32, #tpu.memory_space<vmem>>, vector<4x128xf32>
      tpu.vector_store %arg5[%c0_11, %c0_12], %17 {strides = array<i32>} : memref<4x128xf32, #tpu.memory_space<vmem>>, vector<4x128xf32>,
    } else {
    }
    %c0_i32_3 = arith.constant 0 : i32
    %8 = arith.cmpi eq, %arg2, %c0_i32_3 : i32
    %9 = arith.extui %8 : i1 to i32
    %c0_i32_4 = arith.constant 0 : i32
    %10 = arith.cmpi ne, %9, %c0_i32_4 : i32
    scf.if %10 {
      %c0 = arith.constant 0 : index
      %c0_5 = arith.constant 0 : index
      %11 = vector.load %arg5[%c0, %c0_5] : memref<4x128xf32, #tpu.memory_space<vmem>>, vector<4x128xf32>
      %cst = arith.constant dense<0.000000e+00> : vector<4xf32>
      %12 = vector.multi_reduction <add>, %11, %cst [1] : vector<4x128xf32> to vector<4xf32>
      %13 = vector.shape_cast %12 : vector<4xf32> to vector<4x1xf32>
      %c0_6 = arith.constant 0 : index
      %c0_7 = arith.constant 0 : index
      %c0_8 = arith.constant 0 : index
      %c0_9 = arith.constant 0 : index
      %14 = vector.load %arg4[%c0_6, %c0_7, %c0_8, %c0_9] : memref<1x1x4x1xf32, #tpu.memory_space<vmem>>, vector<1x1x4x1xf32>
      %15 = vector.shape_cast %14 : vector<1x1x4x1xf32> to vector<4x1xf32>
      %16 = vector.shape_cast %13 : vector<4x1xf32> to vector<1x1x4x1xf32>
      tpu.vector_store %arg4[%c0_6, %c0_7, %c0_8, %c0_9], %16 {strides = array<i32>} : memref<1x1x4x1xf32, #tpu.memory_space<vmem>>, vector<1x1x4x1xf32>,
    } else {
    }
    return
  }
  func.func @transform_0(%arg0: i32, %arg1: i32, %arg2: i32) -> (i32, i32, i32) {
    %c1_i32 = arith.constant 1 : i32
    %0 = arith.muli %arg1, %c1_i32 : i32
    %1 = arith.addi %0, %arg2 : i32
    %c0_i32 = arith.constant 0 : i32
    %2 = arith.minsi %1, %c0_i32 : i32
    %c0_i32_0 = arith.constant 0 : i32
    %c0_i32_1 = arith.constant 0 : i32
    return %arg0, %c0_i32_0, %2 : i32, i32, i32
  }
  func.func @transform_1(%arg0: i32, %arg1: i32, %arg2: i32) -> (i32, i32, i32, i32) {
    %c0_i32 = arith.constant 0 : i32
    %c0_i32_0 = arith.constant 0 : i32
    %c0_i32_1 = arith.constant 0 : i32
    return %arg0, %arg1, %c0_i32, %c0_i32_0 : i32, i32, i32, i32
  }
}

</mosaic_0001>

<bundles_post_ra>
// kernel: tpu_custom_call.1
= control target key start
LH: loop header
LB: loop body
LE: loop exit
PB: predicated region body
PF: predicated region fallthrough
CT: control target
= control target key end

     0   :  { %6 = vsyncpa [#allocation4], 0  ;;  %s580_s0 = inlined_call_operand.hbm [shape: f32[2,4,256], index: 0, kind: input, shape index: {}]   ;;  %s581_s1 = inlined_call_operand.vmem [shape: f32[2,1,4,1], index: 1, kind: output, shape index: {}]  }
   0x1   :  { %8 = vsyncpa [#allocation4 + $0x1], 0  ;;  %s455_s6 = smov 0   ;;  %s457_s7 = smov 0  }
   0x2   :  { %s459_s8 = smov 0   ;;  %s461_s9 = smov 0  }
   0x3   :  { %s463_s10 = smov 0   ;;  %s465_s11 = smov 0  }
   0x4 LB: > { %s292_s12 = sadd.s32 4294967295, %s441_s11   ;;  %s33_s13 = sadd.s32 1, %s437_s10  ;;  %s441_s11 = sphi %s465_s11, %s14_s11   ;;  %s437_s10 = sphi %s463_s10, %s591_s10   ;;  %s433_s9 = sphi %s461_s9, %s590_s9   ;;  %s429_s8 = sphi %s459_s8, %s589_s8   ;;  %s425_s7 = sphi %s457_s7, %s588_s7   ;;  %s421_s6 = sphi %s455_s6, %s587_s6  }
   0x5   : > { %p35_p0 = scmp.ge.s32.totalorder %s33_s13, 2  ;;  %s48_s14 = sadd.s32 1, %s429_s8 }
   0x6   : > { %p55_p1 = scmp.ne.s32.totalorder %s429_s8, %s425_s7  ;;  %p56_p2 = scmp.eq.s32.totalorder %s441_s11, 0 }
   0x7   : > { %s593_s13 = smov (%p35_p0, %s33_s13), 0  ;;  %p61_p4 = scmp.ne.s32.totalorder %s425_s7, %s421_s6 }
   0x8   : > { %p491_p3 = por %p56_p2, %p55_p1  ;;  %s43_s16 = ssub.s32 %s437_s10, %s593_s13 }
   0x9   : > { %p62_p5 = scmp.eq.s32.totalorder %s292_s12, 0  ;;  %p46_p6 = scmp.eq.s32.totalorder %s43_s16, 0 }
   0xa   : > { %p311_p8 = scmp.lt.s32.totalorder %s441_s11, 2  ;;  %s113_s19 = sand.u32 1, %s429_s8  }
   0xb   : > { %p498_p7 = por %p62_p5, %p61_p4  ;;  %s304_s20 = sshll.u32 %s437_s10, 7 }
   0xc   : > { %s504_s18 = scalar_select %p46_p6, %s429_s8, %s48_s14  }
   0xd   : > { %s296_s21 = sshll.u32 %s113_s19, 3  ;;  %s511_s24 = scalar_lea.hbm %s580_s0, %s304_s20 }
   0xe   : > { %s117_s25 = scalar_lea.vmem [#allocation3], %s296_s21  ;;  %p515_p9 = pnand %p311_p8, %p491_p3 }
   0xf   : > { %s130_s26 = sshll.u32 %s117_s25, 4  ;;  %s114_s28 = scalar_lea.sflag [#allocation4], %s113_s19  ;;  %s519_s26 = int_to_ptr.vmem [resolvable:$true] %s130_s26 }
  0x10   : > { %s361_s29 = scalar_lea.hbm %s511_s24, 128  ;;  %p363_p13 = pneg %p515_p9 }
  0x11   : > { %p362_p12 = scmp.ne.s32.totalorder %s511_s24, %s361_s29  ;;  %s366_s3 = scalar_lea.hbm %s580_s0, 256 }
  0x12   : > { %p367_p2 = scmp.lt.u32.totalorder %s511_s24, %s580_s0  ;;  %p368_p3 = scmp.lt.u32.totalorder %s366_s3, %s361_s29 }
  0x13   : > { %p364_p0 = pnand %p363_p13, %p362_p12  ;;  %p370_p5 = scmp.lt.u32.totalorder %s361_s29, %s511_s24 }
  0x14   : > { %p369_p4 = por %p368_p3, %p367_p2 }
  0x15   : > { %p365_p1 = pneg %p364_p0 }
  0x16   : > { %p371_p6 = por %p370_p5, %p369_p4 }
  0x18   : > { %p372_p8 = pnand %p371_p6, %p365_p1 }
  0x1a   : > { %375 = shalt.err (!%p372_p8)
}
  0x1b   : > { %s376_s6 = scalar_lea.vmem %s519_s26, 128  ;;  %s443_s12 = smov [#allocation3]  }
  0x1c   : > { %p377_p12 = scmp.ne.s32.totalorder %s519_s26, %s376_s6  ;;  %s381_s14 = sshll.u32 %s443_s12, 4  ;;  %s382_s14 = int_to_ptr.vmem [resolvable:$false] %s381_s14 }
  0x1d   : > { %s383_s15 = scalar_lea.vmem %s382_s14, 256  ;;  %p384_p11 = scmp.lt.s32.totalorder %s519_s26, %s382_s14 }
  0x1e   : > { %p379_p0 = pnand %p377_p12, %p363_p13  ;;  %p385_p2 = scmp.lt.s32.totalorder %s383_s15, %s376_s6 }
  0x20   : > { %p380_p10 = pneg %p379_p0  ;;  %p386_p3 = por %p385_p2, %p384_p11 }
  0x22   : > { %p387_p4 = pnand %p386_p3, %p380_p10 }
  0x24   : > { %390 = shalt.err (!%p387_p4)
}
  0x25   : > { %310 = dma.hbm_to_vmem [thread:$0]  (!%p515_p9), %s511_s24, 128, %s519_s26, %s114_s28  }
  0x26   : > { %p585_p1 = scmp.lt.s32.totalorder %s441_s11, 3  ;;  %p586_p5 = scmp.ge.s32.totalorder %s441_s11, 1 }
  0x28   : > { %p136_p13 = pnand %p586_p5, %p585_p1 }
  0x29   : > { %s141_s16 = sand.u32 (!%p136_p13), 1, %s425_s7  }
  0x2a   : > { %139 = sbr.rel (%p136_p13) target bundleno = 213 (0xd5), region = 24  ;;  %s300_s19 = sshll.u32 (!%p136_p13), %s141_s16, 3 }
  0x2b   : > { %s142_s20 = scalar_lea.sflag (!%p136_p13), [#allocation4], %s141_s16  ;;  %s145_s21 = scalar_lea.vmem (!%p136_p13), [#allocation3], %s300_s19 }
  0x31   : > { %416 = dma.done.wait (%p498_p7), %s142_s20, 128  }
  0x32   : > { %418 = vsyncadd (%p498_p7), %s142_s20, 4294967168  ;;  %v444_v0 = vmov 0.0   ;;  %v187_v1 = vld [vmem:[%s145_s21] sm:$0xf]  ;;  %v188_v2 = vld [vmem:[%s145_s21 + $0x4] sm:$0xf] }
  0x33   : > { %182 = vst [vmem:[#allocation2] sm:$0xf] %v444_v0  ;;  %v189_v3 = vadd.f32 %v188_v2, %v187_v1  ;;  %vm197_vm0 = vcmask 1043456   ;;  %p170_p9 = scmp.lt.s32.totalorder %s433_s9, 1  ;;  %vm201_vm1 = vcmask 3072  }
  0x35   : > { %s595_s9 = smov (!%p170_p9, %s433_s9), 1 }
  0x36   : > { %s301_s22 = sshll.u32 %s595_s9, 2 }
  0x37   : > { %s176_s24 = scalar_lea.vmem %s581_s1, %s301_s22 }
  0x3a   : > { %v190_v4 = vld [vmem:[#allocation2] sm:$0xf] }
  0x3b   : > { %v191_v5 = vadd.f32 %v190_v4, %v189_v3 }
  0x3d   : > { %192 = vst [vmem:[#allocation2] sm:$0xf] %v191_v5 }
  0x44   : > { %v196_v6 = vld [vmem:[#allocation2] sm:$0xf] }
  0x45   : > { %v198_v7 = vsel %vm197_vm0, %v196_v6, 0.0 }
  0x46   : > { %199 = vadd.xlane.f32.xlu0 %v198_v7 }
  0xd3   : > { %v200_v8 = vpop.xlane.xlu0 %199 }
  0xd4   : > { %202 = vst.msk [vmem:[%s176_s24] sm:$0xf] %vm201_vm1, %v200_v8 }
  0xd5 PF: > { %s14_s11 = sadd.s32 1, %s441_s11   ;;  %s587_s6 = smov %s425_s7 }
  0xd6   : > { %p11_p7 = scmp.ge.s32.totalorder %s14_s11, 4   ;;  %s588_s7 = smov %s429_s8 }
  0xd7   : > { %s589_s8 = smov %s504_s18  ;;  %s590_s9 = smov %s437_s10 }
  0xd8   : > { %s591_s10 = smov %s593_s13  ;;  %13 = sbr.rel (!%p11_p7) target bundleno = 4 (0x4), region = 76 }
  0xdf   :  { %228 = vsyncpa [#allocation4], 1 }
  0xe0   :  { %230 = vsyncpa [#allocation4 + $0x1], 1 }

</bundles_post_ra>
